<compile_context>
chip_gen: v7x
topology: tpu7x:2x2x1
jax: 0.10.0
libtpu: 0.0.40
codegen_flags: <defaults>
</compile_context>

<pallas_src>
import functools

import jax
import jax.numpy as jnp
from jax.experimental import pallas as pl
from jax.experimental.pallas import tpu as pltpu


def _pinn_kernel(x_ref, w12_ref, b12_ref, wz_ref, bz_ref, wf_ref, bf_ref,
                 o_ref, *, L, HP):
    # Lane-packed layout:
    #   x_ref  : (tm_p, DIN_P)        w12_ref : (DIN_P, 2*HP)   (W1 || W2)
    #   wz_ref : (L, HP, HP)          wf_ref  : (HP, OUT_PAD)
    # Biases are (1, ...) rows.  Matmuls accumulate in f32 on the MXU;
    # tanh / gate mixing stays in f32 on the EUP / VPU.
    mm_dt = w12_ref.dtype                         # f32, or bf16 when opted in

    xp = x_ref[...].astype(mm_dt)

    # Fused U/V input layer: one (DIN_P x 2HP) matmul instead of two.
    UV = jnp.tanh(jnp.dot(xp, w12_ref[...], preferred_element_type=jnp.float32)
                  + b12_ref[...])
    U = UV[:, :HP]
    D = UV[:, HP:] - U                            # V - U, hoisted out of the loop

    # k = 0 hoisted: H starts at zero, so Z0 = tanh(0 @ Wz0 + bz0) = tanh(bz0).
    Z0 = jnp.tanh(bz_ref[0])                      # (1, HP), broadcast over rows
    Hs = U + Z0 * D

    # Remaining gated mixing layers (L is static -> unrolled).
    for k in range(1, L):
        Zk = jnp.tanh(
            jnp.dot(Hs.astype(mm_dt), wz_ref[k], preferred_element_type=jnp.float32)
            + bz_ref[k])
        Hs = U + Zk * D

    # Final projection into a lane-dense (OUT_PAD = multiple of 128) slab.
    out = (jnp.dot(Hs.astype(mm_dt), wf_ref[...], preferred_element_type=jnp.float32)
           + bf_ref[...])
    o_ref[...] = out.astype(o_ref.dtype)


def pack_params(params, *, matmul_dtype=jnp.float32):
    """Pre-transform PyTorch-layout weights into the lane-packed kernel layout.

    Call ONCE and reuse across forward calls: the kron/tile/pad ops below are
    plain XLA ops and would otherwise rival the kernel wall time at small N.
    matmul_dtype=jnp.bfloat16 enables bf16 MXU operands (f32 accumulation).
    """
    w1, b1 = params["w1"], params["b1"]            # (H, D_in), (H,)
    w2, b2 = params["w2"], params["b2"]            # (H, D_in), (H,)
    wz, bz = params["wz"], params["bz"]            # (L, H, H), (L, H)
    wf, bf = params["wf"], params["bf"]            # (D_out, H), (D_out,)

    H, D_in = w1.shape
    D_out = wf.shape[0]
    L = wz.shape[0]
    assert L >= 1

    # Lane packing: PACK batch rows per 128-lane vreg row (only when H | 128).
    PACK = 128 // H if (H < 128 and 128 % H == 0) else 1
    HP = PACK * H
    DIN_P = PACK * D_in
    DOUT_P = PACK * D_out
    OUT_PAD = max(128, pl.cdiv(DOUT_P, 128) * 128)  # lane-dense output width

    eye = jnp.eye(PACK, dtype=w1.dtype)
    blk = lambda w: jnp.kron(eye, w)                # block-diagonal kron(I_PACK, w)
    mm = matmul_dtype

    w12b = jnp.concatenate([blk(w1.T), blk(w2.T)], axis=1).astype(mm)    # (DIN_P, 2HP)
    b12b = jnp.concatenate([jnp.tile(b1, PACK), jnp.tile(b2, PACK)])[None, :]
    wzb = jnp.stack([blk(wz[k].T) for k in range(L)]).astype(mm)         # (L, HP, HP)
    bzb = jnp.tile(bz, (1, PACK))[:, None, :]                            # (L, 1, HP)
    wfb = jnp.pad(blk(wf.T), ((0, 0), (0, OUT_PAD - DOUT_P))).astype(mm)  # (HP, OUT_PAD)
    bfb = jnp.pad(jnp.tile(bf, PACK), (0, OUT_PAD - DOUT_P))[None, :]

    arrays = dict(w12=w12b, b12=b12b, wz=wzb, bz=bzb, wf=wfb, bf=bfb)
    meta = dict(D_in=D_in, D_out=D_out, L=L, PACK=PACK, HP=HP,
                DIN_P=DIN_P, DOUT_P=DOUT_P, OUT_PAD=OUT_PAD)
    return arrays, meta


def _num_tensorcores_per_chip():
    # Only TPU v7x has 2 TensorCores per chip; v5e / v6e have 1.
    try:
        kind = jax.devices()[0].device_kind.lower()
    except Exception:
        return 1
    return 2 if ("v7" in kind or "7x" in kind) else 1


def pinns_forward_packed(x, packed, *, tile_m=8192, num_tensorcores=None):
    """x: [N, input_dim] float32. packed: result of pack_params()."""
    arrays, meta = packed
    PACK, HP = meta["PACK"], meta["HP"]
    DIN_P, D_in = meta["DIN_P"], meta["D_in"]
    DOUT_P, D_out = meta["DOUT_P"], meta["D_out"]
    OUT_PAD, L = meta["OUT_PAD"], meta["L"]

    N = x.shape[0]
    assert x.shape[1] == D_in

    if num_tensorcores is None:
        num_tensorcores = _num_tensorcores_per_chip()

    # ---- tile sizing (in original batch rows); packed tile rows must be x8.
    align = PACK * 8

    # VMEM-aware cap: ~5 HP-wide f32 intermediates (UV, U, D, Hs/Zk) plus
    # double-buffered x/out tiles per packed row, leaving room for the
    # (double-buffered) resident weights under the 32 MiB scoped limit.
    w_bytes = 2 * sum(int(a.size) * a.dtype.itemsize for a in arrays.values())
    row_bytes = 4 * (5 * HP + 2 * OUT_PAD + 2 * DIN_P)
    budget = max(1 << 20, (24 << 20) - w_bytes)
    max_tile_m = max(align, (int(budget // row_bytes) * PACK) // align * align)

    n_align = pl.cdiv(N, align) * align
    tile_m = min(tile_m, max_tile_m, n_align)
    tile_m = max(align, (tile_m // align) * align)
    n_steps = pl.cdiv(n_align, tile_m)

    # Generation-aware split: only v7x has 2 TensorCores, and there we want an
    # even, balanced grid step count so neither core idles on a tail.
    if num_tensorcores > 1 and n_steps % num_tensorcores != 0:
        target = pl.cdiv(n_steps, num_tensorcores) * num_tensorcores
        cand = pl.cdiv(pl.cdiv(n_align, target), align) * align
        if align <= cand < tile_m:
            tile_m = cand
            n_steps = pl.cdiv(n_align, tile_m)
    n_pad = n_steps * tile_m

    xp = x if n_pad == N else jnp.pad(x, ((0, n_pad - N), (0, 0)))
    xp = xp.reshape(n_pad // PACK, DIN_P)          # row r = [x[P*r], ..., x[P*r+P-1]]

    tm_p = tile_m // PACK

    def full(shape):
        ndim = len(shape)
        return pl.BlockSpec(shape, lambda i: (0,) * ndim)

    out_packed = pl.pallas_call(
        functools.partial(_pinn_kernel, L=L, HP=HP),
        out_shape=jax.ShapeDtypeStruct((n_pad // PACK, OUT_PAD), x.dtype),
        grid_spec=pltpu.PrefetchScalarGridSpec(
            num_scalar_prefetch=0,
            grid=(n_steps,),
            in_specs=[
                pl.BlockSpec((tm_p, DIN_P), lambda i: (i, 0)),   # packed x tile
                full((DIN_P, 2 * HP)), full((1, 2 * HP)),        # fused W1||W2, b1||b2
                full((L, HP, HP)), full((L, 1, HP)),             # gate layers
                full((HP, OUT_PAD)), full((1, OUT_PAD)),         # final (lane-padded)
            ],
            out_specs=pl.BlockSpec((tm_p, OUT_PAD), lambda i: (i, 0)),
        ),
        compiler_params=pltpu.CompilerParams(
            dimension_semantics=("parallel",),
            vmem_limit_bytes=32 << 20),
    )(xp, arrays["w12"], arrays["b12"], arrays["wz"], arrays["bz"],
      arrays["wf"], arrays["bf"])

    # Unpack: drop zero-padded lanes, undo row packing, drop batch padding.
    # (Lane-dense store kept in the kernel; this slice is a cheap XLA epilogue.)
    out = out_packed[:, :DOUT_P].reshape(n_pad, D_out)
    return out[:N]


def pinns_mlp_kovasznay(x, params, **kwargs):
    """Convenience wrapper: packs weights then runs the kernel (pack once if hot)."""
    return pinns_forward_packed(x, pack_params(params), **kwargs)


def make_params(key, input_dim=2, hidden_dim=32, output_dim=3, L=4):
    """Deterministic synthetic parameters in PyTorch layout (W: [out, in])."""
    ks = jax.random.split(key, 6 + L)
    s_in = 1.0 / jnp.sqrt(input_dim)
    s_h = 1.0 / jnp.sqrt(hidden_dim)
    w1 = jax.random.uniform(ks[0], (hidden_dim, input_dim), jnp.float32, -s_in, s_in)
    b1 = jax.random.uniform(ks[1], (hidden_dim,), jnp.float32, -s_in, s_in)
    w2 = jax.random.uniform(ks[2], (hidden_dim, input_dim), jnp.float32, -s_in, s_in)
    b2 = jax.random.uniform(ks[3], (hidden_dim,), jnp.float32, -s_in, s_in)
    wz = jnp.stack([
        jax.random.uniform(ks[6 + k], (hidden_dim, hidden_dim), jnp.float32, -s_h, s_h)
        for k in range(L)
    ])
    # bz is zero-initialized in the module but learnable; use small nonzero values
    # so the hoisted k=0 gate path is actually exercised.
    bz = 0.1 * jax.random.normal(jax.random.fold_in(key, 7), (L, hidden_dim), jnp.float32)
    wf = jax.random.uniform(ks[4], (output_dim, hidden_dim), jnp.float32, -s_h, s_h)
    bf = jax.random.uniform(ks[5], (output_dim,), jnp.float32, -s_h, s_h)
    return {"w1": w1, "b1": b1, "w2": w2, "b2": b2,
            "wz": wz, "bz": bz, "wf": wf, "bf": bf}


def reference_forward(x, params):
    """Pure-JAX mirror of the PyTorch forward (F.linear(x, W, b) = x @ W.T + b)."""
    U = jnp.tanh(x @ params["w1"].T + params["b1"])
    V = jnp.tanh(x @ params["w2"].T + params["b2"])
    H = jnp.zeros_like(U)
    for k in range(params["wz"].shape[0]):
        Zk = jnp.tanh(H @ params["wz"][k].T + params["bz"][k])
        H = (1.0 - Zk) * U + Zk * V
    return H @ params["wf"].T + params["bf"]


if __name__ == "__main__":
    key = jax.random.PRNGKey(0)
    k_x, k_p = jax.random.split(key)

    N, input_dim, hidden_dim, output_dim, L = 64, 2, 32, 3, 4
    x = jax.random.normal(k_x, (N, input_dim), jnp.float32)
    params = make_params(k_p, input_dim, hidden_dim, output_dim, L)

    packed = pack_params(params)               # build block-diag weights ONCE
    out = pinns_forward_packed(x, packed)
    out = jax.block_until_ready(out)

    ref = reference_forward(x, params)
    assert out.shape == (N, output_dim)
    assert jnp.allclose(out, ref, atol=1e-5, rtol=1e-5)

    print("KERNEL_OK")
</pallas_src>

<mosaic_0001>
module attributes {stable_mosaic.version = 11 : i64} {
  func.func @_pinn_kernel(%arg0: i32, %arg1: memref<16x8xf32, #tpu.memory_space<vmem>>, %arg2: memref<8x256xf32, #tpu.memory_space<vmem>>, %arg3: memref<1x256xf32, #tpu.memory_space<vmem>>, %arg4: memref<4x128x128xf32, #tpu.memory_space<vmem>>, %arg5: memref<4x1x128xf32, #tpu.memory_space<vmem>>, %arg6: memref<128x128xf32, #tpu.memory_space<vmem>>, %arg7: memref<1x128xf32, #tpu.memory_space<vmem>>, %arg8: memref<16x128xf32, #tpu.memory_space<vmem>>) attributes {dimension_semantics = [#tpu.dimension_semantics<parallel>], iteration_bounds = array<i64: 1>, scalar_prefetch = 0 : i64, scratch_operands = 0 : i64, tpu.core_type = #tpu.core_type<tc>, window_params = [{transform_indices = @transform_0, window_bounds = array<i64: 16, 8>}, {pipeline_mode = #tpu.pipeline_mode<synchronous>, transform_indices = @transform_1, window_bounds = array<i64: 8, 256>}, {pipeline_mode = #tpu.pipeline_mode<synchronous>, transform_indices = @transform_2, window_bounds = array<i64: 1, 256>}, {pipeline_mode = #tpu.pipeline_mode<synchronous>, transform_indices = @transform_3, window_bounds = array<i64: 4, 128, 128>}, {pipeline_mode = #tpu.pipeline_mode<synchronous>, transform_indices = @transform_4, window_bounds = array<i64: 4, 1, 128>}, {pipeline_mode = #tpu.pipeline_mode<synchronous>, transform_indices = @transform_5, window_bounds = array<i64: 128, 128>}, {pipeline_mode = #tpu.pipeline_mode<synchronous>, transform_indices = @transform_6, window_bounds = array<i64: 1, 128>}, {transform_indices = @transform_7, window_bounds = array<i64: 16, 128>}]} {
    %c0 = arith.constant 0 : index
    %c0_0 = arith.constant 0 : index
    %0 = vector.load %arg1[%c0, %c0_0] : memref<16x8xf32, #tpu.memory_space<vmem>>, vector<16x8xf32>
    %c0_1 = arith.constant 0 : index
    %c0_2 = arith.constant 0 : index
    %1 = vector.load %arg2[%c0_1, %c0_2] : memref<8x256xf32, #tpu.memory_space<vmem>>, vector<8x256xf32>
    %cst = arith.constant dense<0.000000e+00> : vector<16x256xf32>
    %2 = tpu.matmul %0, %1, %cst {dimension_numbers = #tpu.dot_dimension_numbers<[1], [0], [0], [1], [0, 0, 1, 1], [], []>} : vector<16x8xf32>, vector<8x256xf32>, vector<16x256xf32> -> vector<16x256xf32>
    %c0_3 = arith.constant 0 : index
    %c0_4 = arith.constant 0 : index
    %3 = vector.load %arg3[%c0_3, %c0_4] : memref<1x256xf32, #tpu.memory_space<vmem>>, vector<1x256xf32>
    %4 = vector.broadcast %3 : vector<1x256xf32> to vector<16x256xf32>
    %5 = arith.addf %2, %4 : vector<16x256xf32>
    %6 = math.tanh %5 : vector<16x256xf32>
    %7 = vector.extract_strided_slice %6 {offsets = [0, 0], sizes = [16, 128], strides = [1, 1]} : vector<16x256xf32> to vector<16x128xf32>
    %8 = vector.extract_strided_slice %6 {offsets = [0, 128], sizes = [16, 128], strides = [1, 1]} : vector<16x256xf32> to vector<16x128xf32>
    %9 = arith.subf %8, %7 : vector<16x128xf32>
    %c0_5 = arith.constant 0 : index
    %c0_6 = arith.constant 0 : index
    %c0_7 = arith.constant 0 : index
    %10 = vector.load %arg5[%c0_5, %c0_6, %c0_7] : memref<4x1x128xf32, #tpu.memory_space<vmem>>, vector<1x1x128xf32>
    %11 = vector.shape_cast %10 : vector<1x1x128xf32> to vector<1x128xf32>
    %12 = math.tanh %11 : vector<1x128xf32>
    %13 = vector.broadcast %12 : vector<1x128xf32> to vector<16x128xf32>
    %14 = arith.mulf %13, %9 : vector<16x128xf32>
    %15 = arith.addf %7, %14 : vector<16x128xf32>
    %c1 = arith.constant 1 : index
    %c0_8 = arith.constant 0 : index
    %c0_9 = arith.constant 0 : index
    %16 = vector.load %arg4[%c1, %c0_8, %c0_9] : memref<4x128x128xf32, #tpu.memory_space<vmem>>, vector<1x128x128xf32>
    %17 = vector.shape_cast %16 : vector<1x128x128xf32> to vector<128x128xf32>
    %cst_10 = arith.constant dense<0.000000e+00> : vector<16x128xf32>
    %18 = tpu.matmul %15, %17, %cst_10 {dimension_numbers = #tpu.dot_dimension_numbers<[1], [0], [0], [1], [0, 0, 1, 1], [], []>} : vector<16x128xf32>, vector<128x128xf32>, vector<16x128xf32> -> vector<16x128xf32>
    %c1_11 = arith.constant 1 : index
    %c0_12 = arith.constant 0 : index
    %c0_13 = arith.constant 0 : index
    %19 = vector.load %arg5[%c1_11, %c0_12, %c0_13] : memref<4x1x128xf32, #tpu.memory_space<vmem>>, vector<1x1x128xf32>
    %20 = vector.shape_cast %19 : vector<1x1x128xf32> to vector<1x128xf32>
    %21 = vector.broadcast %20 : vector<1x128xf32> to vector<16x128xf32>
    %22 = arith.addf %18, %21 : vector<16x128xf32>
    %23 = math.tanh %22 : vector<16x128xf32>
    %24 = arith.mulf %23, %9 : vector<16x128xf32>
    %25 = arith.addf %7, %24 : vector<16x128xf32>
    %c2 = arith.constant 2 : index
    %c0_14 = arith.constant 0 : index
    %c0_15 = arith.constant 0 : index
    %26 = vector.load %arg4[%c2, %c0_14, %c0_15] : memref<4x128x128xf32, #tpu.memory_space<vmem>>, vector<1x128x128xf32>
    %27 = vector.shape_cast %26 : vector<1x128x128xf32> to vector<128x128xf32>
    %cst_16 = arith.constant dense<0.000000e+00> : vector<16x128xf32>
    %28 = tpu.matmul %25, %27, %cst_16 {dimension_numbers = #tpu.dot_dimension_numbers<[1], [0], [0], [1], [0, 0, 1, 1], [], []>} : vector<16x128xf32>, vector<128x128xf32>, vector<16x128xf32> -> vector<16x128xf32>
    %c2_17 = arith.constant 2 : index
    %c0_18 = arith.constant 0 : index
    %c0_19 = arith.constant 0 : index
    %29 = vector.load %arg5[%c2_17, %c0_18, %c0_19] : memref<4x1x128xf32, #tpu.memory_space<vmem>>, vector<1x1x128xf32>
    %30 = vector.shape_cast %29 : vector<1x1x128xf32> to vector<1x128xf32>
    %31 = vector.broadcast %30 : vector<1x128xf32> to vector<16x128xf32>
    %32 = arith.addf %28, %31 : vector<16x128xf32>
    %33 = math.tanh %32 : vector<16x128xf32>
    %34 = arith.mulf %33, %9 : vector<16x128xf32>
    %35 = arith.addf %7, %34 : vector<16x128xf32>
    %c3 = arith.constant 3 : index
    %c0_20 = arith.constant 0 : index
    %c0_21 = arith.constant 0 : index
    %36 = vector.load %arg4[%c3, %c0_20, %c0_21] : memref<4x128x128xf32, #tpu.memory_space<vmem>>, vector<1x128x128xf32>
    %37 = vector.shape_cast %36 : vector<1x128x128xf32> to vector<128x128xf32>
    %cst_22 = arith.constant dense<0.000000e+00> : vector<16x128xf32>
    %38 = tpu.matmul %35, %37, %cst_22 {dimension_numbers = #tpu.dot_dimension_numbers<[1], [0], [0], [1], [0, 0, 1, 1], [], []>} : vector<16x128xf32>, vector<128x128xf32>, vector<16x128xf32> -> vector<16x128xf32>
    %c3_23 = arith.constant 3 : index
    %c0_24 = arith.constant 0 : index
    %c0_25 = arith.constant 0 : index
    %39 = vector.load %arg5[%c3_23, %c0_24, %c0_25] : memref<4x1x128xf32, #tpu.memory_space<vmem>>, vector<1x1x128xf32>
    %40 = vector.shape_cast %39 : vector<1x1x128xf32> to vector<1x128xf32>
    %41 = vector.broadcast %40 : vector<1x128xf32> to vector<16x128xf32>
    %42 = arith.addf %38, %41 : vector<16x128xf32>
    %43 = math.tanh %42 : vector<16x128xf32>
    %44 = arith.mulf %43, %9 : vector<16x128xf32>
    %45 = arith.addf %7, %44 : vector<16x128xf32>
    %c0_26 = arith.constant 0 : index
    %c0_27 = arith.constant 0 : index
    %46 = vector.load %arg6[%c0_26, %c0_27] : memref<128x128xf32, #tpu.memory_space<vmem>>, vector<128x128xf32>
    %cst_28 = arith.constant dense<0.000000e+00> : vector<16x128xf32>
    %47 = tpu.matmul %45, %46, %cst_28 {dimension_numbers = #tpu.dot_dimension_numbers<[1], [0], [0], [1], [0, 0, 1, 1], [], []>} : vector<16x128xf32>, vector<128x128xf32>, vector<16x128xf32> -> vector<16x128xf32>
    %c0_29 = arith.constant 0 : index
    %c0_30 = arith.constant 0 : index
    %48 = vector.load %arg7[%c0_29, %c0_30] : memref<1x128xf32, #tpu.memory_space<vmem>>, vector<1x128xf32>
    %49 = vector.broadcast %48 : vector<1x128xf32> to vector<16x128xf32>
    %50 = arith.addf %47, %49 : vector<16x128xf32>
    %c0_31 = arith.constant 0 : index
    %c0_32 = arith.constant 0 : index
    %51 = vector.load %arg8[%c0_31, %c0_32] : memref<16x128xf32, #tpu.memory_space<vmem>>, vector<16x128xf32>
    tpu.vector_store %arg8[%c0_31, %c0_32], %50 {strides = array<i32>} : memref<16x128xf32, #tpu.memory_space<vmem>>, vector<16x128xf32>,
    return
  }
  func.func @transform_0(%arg0: i32) -> (i32, i32) {
    %c0_i32 = arith.constant 0 : i32
    %c0_i32_0 = arith.constant 0 : i32
    return %arg0, %c0_i32 : i32, i32
  }
  func.func @transform_1(%arg0: i32) -> (i32, i32) {
    %c0_i32 = arith.constant 0 : i32
    %c0_i32_0 = arith.constant 0 : i32
    %c0_i32_1 = arith.constant 0 : i32
    return %c0_i32, %c0_i32_0 : i32, i32
  }
  func.func @transform_2(%arg0: i32) -> (i32, i32) {
    %c0_i32 = arith.constant 0 : i32
    %c0_i32_0 = arith.constant 0 : i32
    %c0_i32_1 = arith.constant 0 : i32
    return %c0_i32, %c0_i32_0 : i32, i32
  }
  func.func @transform_3(%arg0: i32) -> (i32, i32, i32) {
    %c0_i32 = arith.constant 0 : i32
    %c0_i32_0 = arith.constant 0 : i32
    %c0_i32_1 = arith.constant 0 : i32
    %c0_i32_2 = arith.constant 0 : i32
    return %c0_i32, %c0_i32_0, %c0_i32_1 : i32, i32, i32
  }
  func.func @transform_4(%arg0: i32) -> (i32, i32, i32) {
    %c0_i32 = arith.constant 0 : i32
    %c0_i32_0 = arith.constant 0 : i32
    %c0_i32_1 = arith.constant 0 : i32
    %c0_i32_2 = arith.constant 0 : i32
    return %c0_i32, %c0_i32_0, %c0_i32_1 : i32, i32, i32
  }
  func.func @transform_5(%arg0: i32) -> (i32, i32) {
    %c0_i32 = arith.constant 0 : i32
    %c0_i32_0 = arith.constant 0 : i32
    %c0_i32_1 = arith.constant 0 : i32
    return %c0_i32, %c0_i32_0 : i32, i32
  }
  func.func @transform_6(%arg0: i32) -> (i32, i32) {
    %c0_i32 = arith.constant 0 : i32
    %c0_i32_0 = arith.constant 0 : i32
    %c0_i32_1 = arith.constant 0 : i32
    return %c0_i32, %c0_i32_0 : i32, i32
  }
  func.func @transform_7(%arg0: i32) -> (i32, i32) {
    %c0_i32 = arith.constant 0 : i32
    %c0_i32_0 = arith.constant 0 : i32
    return %arg0, %c0_i32 : i32, i32
  }
}

</mosaic_0001>

<bundles_post_ra>
// kernel: tpu_custom_call.1
= control target key start
LH: loop header
LB: loop body
LE: loop exit
PB: predicated region body
PF: predicated region fallthrough
CT: control target
= control target key end

     0   :  { %12 = vsyncpa [#allocation3], 0  ;;  %s1205_s0 = inlined_call_operand.vmem [shape: f32[16,8], index: 0, kind: input, shape index: {}]   ;;  %s1206_s1 = inlined_call_operand.vmem [shape: f32[8,256], index: 1, kind: input, shape index: {}]   ;;  %s1207_s2 = inlined_call_operand.vmem [shape: f32[1,256], index: 2, kind: input, shape index: {}]   ;;  %s1208_s3 = inlined_call_operand.hbm [shape: f32[4,128,128], index: 3, kind: input, shape index: {}]   ;;  %s1209_s4 = inlined_call_operand.vmem [shape: f32[4,1,128], index: 4, kind: input, shape index: {}]   ;;  %s1210_s5 = inlined_call_operand.hbm [shape: f32[128,128], index: 5, kind: input, shape index: {}]   ;;  %s1211_s6 = inlined_call_operand.vmem [shape: f32[1,128], index: 6, kind: input, shape index: {}]   ;;  %s1212_s7 = inlined_call_operand.hbm [shape: f32[16,128], index: 7, kind: output, shape index: {}]  }
   0x1   :  { %13 = vsyncpa [#allocation6], 0 }
   0x2   :  { %14 = vsyncpa [#allocation4], 0  ;;  %s1058_s24 = smov [#allocation2]   ;;  %s986_s28 = scalar_lea.hbm %s1208_s3, 8192 }
   0x3   :  { %s26_s25 = sshll.u32 %s1058_s24, 4  ;;  %p987_p0 = scmp.ne.s32.totalorder %s1208_s3, %s986_s28  ;;  %s27_s25 = int_to_ptr.vmem [resolvable:$true] %s26_s25 }
   0x4   :  { %p990_p1 = scmp.lt.u32.totalorder %s986_s28, %s1208_s3 }
   0x6   :  { %p992_p2 = pnand %p990_p1, %p987_p0 }
   0x8   :  { %995 = shalt.err (!%p992_p2)
}
   0x9   :  { %s996_s10 = scalar_lea.vmem %s27_s25, 8192  ;;  %p1001_p4 = scmp.lt.s32.totalorder %s27_s25, %s27_s25 }
   0xa   :  { %p997_p3 = scmp.ne.s32.totalorder %s27_s25, %s996_s10  ;;  %p1002_p5 = scmp.lt.s32.totalorder %s996_s10, %s996_s10 }
   0xc   :  { %p1003_p6 = por %p1002_p5, %p1001_p4 }
   0xe   :  { %p1004_p7 = pnand %p1003_p6, %p997_p3 }
  0x10   :  { %1007 = shalt.err (!%p1004_p7)
}
  0x11   :  { %s1059_s11 = smov 128   ;;  %s1060_s12 = smov 8  }
  0x12   :  { %32 = dma.hbm_to_vmem [thread:$0]  %s1208_s3, 8192, %s27_s25, [#allocation3], %s1059_s11, %s1059_s11, %s1060_s12  }
  0x13   :  { %s1061_s15 = smov [#allocation5]   ;;  %s1008_s19 = scalar_lea.hbm %s1210_s5, 2048 }
  0x14   :  { %s40_s16 = sshll.u32 %s1061_s15, 4  ;;  %p1009_p8 = scmp.ne.s32.totalorder %s1210_s5, %s1008_s19  ;;  %s41_s16 = int_to_ptr.vmem [resolvable:$true] %s40_s16 }
  0x15   :  { %p1012_p9 = scmp.lt.u32.totalorder %s1008_s19, %s1210_s5 }
  0x17   :  { %p1014_p10 = pnand %p1012_p9, %p1009_p8 }
  0x19   :  { %1017 = shalt.err (!%p1014_p10)
}
  0x1a   :  { %s1018_s24 = scalar_lea.vmem %s41_s16, 2048  ;;  %p1023_p12 = scmp.lt.s32.totalorder %s41_s16, %s41_s16 }
  0x1b   :  { %p1019_p11 = scmp.ne.s32.totalorder %s41_s16, %s1018_s24  ;;  %p1024_p13 = scmp.lt.s32.totalorder %s1018_s24, %s1018_s24 }
  0x1d   :  { %p1025_p0 = por %p1024_p13, %p1023_p12 }
  0x1f   :  { %p1026_p1 = pnand %p1025_p0, %p1019_p11 }
  0x21   :  { %1029 = shalt.err (!%p1026_p1)
}
  0x22   :  { %46 = dma.hbm_to_vmem [thread:$0]  %s1210_s5, 2048, %s41_s16, [#allocation6], %s1059_s11, %s1059_s11, %s1060_s12  }
  0x23   :  { %1052 = dma.done.wait [#allocation3], 8192  }
  0x24   :  { %1053 = vsyncadd [#allocation3], 4294959104 }
  0x25   :  { %1054 = dma.done.wait [#allocation6], 2048  }
  0x26   :  { %1055 = vsyncadd [#allocation6], 4294965248  ;;  %v1062_v0 = vmov 0.0   ;;  %v58_v1 = vld [vmem:[%s1206_s1 + $0x8] sm:$0xff]  ;;  %v57_v2 = vld [vmem:[%s1206_s1] sm:$0xff]  ;;  %vm71_vm0 = vcmask 64512   ;;  %v61_v38 = vlaneseq }
  0x27   :  { %142 = vmatprep.mubr.f32.mxu0 %v1062_v0  ;;  %v55_v3 = vld [vmem:[%s1205_s0] sm:$0xff]  ;;  %78 = vmatprep.subr.mxu0 %v58_v1  ;;  %v174_v4 = vld [vmem:[#allocation2 + $0x80] sm:$0xff]  ;;  %v175_v5 = vld [vmem:[#allocation2 + $0x88] sm:$0xff]  ;;  %s1063_s20 = smov [#allocation7]  }
  0x28   :  { %79 = vmatpush1.msra.mxu0 %v57_v2  ;;  %v830_v6 = vpack.c.bf16 %v175_v5, %v174_v4  ;;  %v176_v7 = vld [vmem:[#allocation2 + $0x90] sm:$0xff]  ;;  %v177_v8 = vld [vmem:[#allocation2 + $0x98] sm:$0xff]  ;;  %v178_v11 = vld [vmem:[#allocation2 + $0xa0] sm:$0xff]  ;;  %v62_v39 = vshrl.u32 %v61_v38, 7  ;;  %s596_s21 = sshll.u32 %s1063_s20, 4  ;;  %s597_s21 = int_to_ptr.vmem [resolvable:$true] %s596_s21 }
  0x29   :  { %609 = vmatmul.mubr.msk.f32.vlgmr.msra.gmra.mrb[0].mxu0 %vm71_vm0, %v55_v3  ;;  %v834_v9 = vpack.c.bf16 %v177_v8, %v176_v7  ;;  %v56_v10 = vld [vmem:[%s1205_s0 + $0x8] sm:$0xff]  ;;  %v179_v12 = vld [vmem:[#allocation2 + $0xa8] sm:$0xff]  ;;  %v180_v14 = vld [vmem:[#allocation2 + $0xb0] sm:$0xff]  ;;  %s1030_s22 = scalar_lea.vmem %s597_s21, 256  ;;  %p1035_p3 = scmp.lt.s32.totalorder %s597_s21, %s597_s21 }
  0x2a   :  { %148 = vmatprep.mubr.f32.mxu0 %v1062_v0  ;;  %831 = vmatprep.subr.bf16.mxu1 %v830_v6  ;;  %v838_v13 = vpack.c.bf16 %v179_v12, %v178_v11  ;;  %v181_v15 = vld [vmem:[#allocation2 + $0xb8] sm:$0xff]  ;;  %v182_v17 = vld [vmem:[#allocation2 + $0xc0] sm:$0xff]  ;;  %v183_v18 = vld [vmem:[#allocation2 + $0xc8] sm:$0xff]  ;;  %v63_v40 = vsub.s32 0, %v62_v39  ;;  %v67_v42 = vsub.s32 1, %v62_v39  ;;  %p1031_p2 = scmp.ne.s32.totalorder %s597_s21, %s1030_s22  ;;  %p1036_p4 = scmp.lt.s32.totalorder %s1030_s22, %s1030_s22 }
  0x2b   :  { %833 = vmatpush3.bf16.msra.mxu1 %v830_v6  ;;  %v842_v16 = vpack.c.bf16 %v181_v15, %v180_v14  ;;  %v846_v19 = vpack.c.bf16 %v183_v18, %v182_v17  ;;  %v184_v20 = vld [vmem:[#allocation2 + $0xd0] sm:$0xff]  ;;  %v185_v21 = vld [vmem:[#allocation2 + $0xd8] sm:$0xff]  ;;  %v186_v23 = vld [vmem:[#allocation2 + $0xe0] sm:$0xff] }
  0x2c   :  { %835 = vmatprep.subr.bf16.mxu1 %v834_v9  ;;  %v850_v22 = vpack.c.bf16 %v185_v21, %v184_v20  ;;  %v187_v24 = vld [vmem:[#allocation2 + $0xe8] sm:$0xff]  ;;  %v188_v26 = vld [vmem:[#allocation2 + $0xf0] sm:$0xff]  ;;  %v189_v27 = vld [vmem:[#allocation2 + $0xf8] sm:$0xff]  ;;  %p1037_p5 = por %p1036_p4, %p1035_p3 }
  0x2d   :  { %610 = vmatmul.mubr.msk.f32.gmra.mrb[2].mxu0 %vm71_vm0, %v56_v10  ;;  %v854_v25 = vpack.c.bf16 %v187_v24, %v186_v23  ;;  %v858_v28 = vpack.c.bf16 %v189_v27, %v188_v26  ;;  %v280_v29 = vld [vmem:[#allocation2 + $0x100] sm:$0xff]  ;;  %v281_v30 = vld [vmem:[#allocation2 + $0x108] sm:$0xff]  ;;  %v282_v31 = vld [vmem:[#allocation2 + $0x110] sm:$0xff] }
  0x2e   :  { %v862_v32 = vpack.c.bf16 %v281_v30, %v280_v29  ;;  %v283_v33 = vld [vmem:[#allocation2 + $0x118] sm:$0xff]  ;;  %v284_v35 = vld [vmem:[#allocation2 + $0x120] sm:$0xff]  ;;  %v285_v36 = vld [vmem:[#allocation2 + $0x128] sm:$0xff]  ;;  %p1038_p6 = pnand %p1037_p5, %p1031_p2 }
  0x2f   :  { %837 = vmatpush3.bf16.msra.mxu1 %v834_v9  ;;  %v866_v34 = vpack.c.bf16 %v283_v33, %v282_v31  ;;  %v870_v37 = vpack.c.bf16 %v285_v36, %v284_v35  ;;  %v59_v41 = vld [vmem:[%s1207_s2] sm:$0x3]  ;;  %v287_v3 = vld [vmem:[#allocation2 + $0x138] sm:$0xff]  ;;  %v288_v5 = vld [vmem:[#allocation2 + $0x140] sm:$0xff] }
  0x30   :  { %839 = vmatprep.subr.bf16.mxu1 %v838_v13  ;;  %863 = vmatprep.subr.bf16.mxu0 %v862_v32  ;;  %v64_v43 = vrot.slane %v59_v41, %v63_v40  ;;  %v161_v44 = vld [vmem:[%s1209_s4] sm:$0x1]  ;;  %v68_v45 = vrot.slane %v59_v41, %v67_v42  ;;  %v289_v6 = vld [vmem:[#allocation2 + $0x148] sm:$0xff]  ;;  %v291_v9 = vld [vmem:[#allocation2 + $0x158] sm:$0xff] }
  0x31   :  { %865 = vmatpush3.bf16.msra.mxu0 %v862_v32  ;;  %964 = vtanh.f32 %v161_v44  ;;  %v286_v2 = vld [vmem:[#allocation2 + $0x130] sm:$0xff]  ;;  %v878_v7 = vpack.c.bf16 %v289_v6, %v288_v5  ;;  %v292_v11 = vld [vmem:[#allocation2 + $0x160] sm:$0xff]  ;;  %v293_v12 = vld [vmem:[#allocation2 + $0x168] sm:$0xff] }
  0x32   :  { %867 = vmatprep.subr.bf16.mxu0 %v866_v34  ;;  %v874_v4 = vpack.c.bf16 %v287_v3, %v286_v2  ;;  %v290_v8 = vld [vmem:[#allocation2 + $0x150] sm:$0xff]  ;;  %v295_v15 = vld [vmem:[#allocation2 + $0x178] sm:$0xff]  ;;  %v386_v17 = vld [vmem:[#allocation2 + $0x180] sm:$0xff] }
  0x33   :  { %841 = vmatpush3.bf16.msra.mxu1 %v838_v13  ;;  %v882_v10 = vpack.c.bf16 %v291_v9, %v290_v8  ;;  %v886_v13 = vpack.c.bf16 %v293_v12, %v292_v11  ;;  %v294_v14 = vld [vmem:[#allocation2 + $0x170] sm:$0xff]  ;;  %v387_v18 = vld [vmem:[#allocation2 + $0x188] sm:$0xff]  ;;  %v389_v21 = vld [vmem:[#allocation2 + $0x198] sm:$0xff] }
  0x34   :  { %843 = vmatprep.subr.bf16.mxu1 %v842_v16  ;;  %v894_v20 = vpack.c.bf16 %v387_v18, %v386_v17  ;;  %v390_v23 = vld [vmem:[#allocation2 + $0x1a0] sm:$0xff]  ;;  %v391_v24 = vld [vmem:[#allocation2 + $0x1a8] sm:$0xff]  ;;  %v612_v26 = vld [vmem:[%s1209_s4 + $0x1] ss:$0 sm:$0xff] }
  0x35   :  { %869 = vmatpush3.bf16.msra.mxu0 %v866_v34  ;;  %v393_v38 = vld [vmem:[#allocation2 + $0x1b8] sm:$0xff]  ;;  %v395_v41 = vld [vmem:[#allocation2 + $0x1c8] sm:$0xff]  ;;  %v497_v12 = vld [vmem:[#allocation5 + $0x30] sm:$0xff] }
  0x36   :  { %871 = vmatprep.subr.bf16.mxu0 %v870_v37  ;;  %v397_v44 = vld [vmem:[#allocation2 + $0x1d8] sm:$0xff]  ;;  %v501_v18 = vld [vmem:[#allocation5 + $0x50] sm:$0xff] }
  0x37   :  { %845 = vmatpush3.bf16.msra.mxu1 %v842_v16  ;;  %v890_v16 = vpack.c.bf16 %v295_v15, %v294_v14  ;;  %v499_v15 = vld [vmem:[#allocation5 + $0x40] sm:$0xff] }
  0x38   :  { %847 = vmatprep.subr.bf16.mxu1 %v846_v19 }
  0x39   :  { %873 = vmatpush3.bf16.msra.mxu0 %v870_v37  ;;  %v392_v37 = vld [vmem:[#allocation2 + $0x1b0] sm:$0xff] }
  0x3a   :  { %875 = vmatprep.subr.bf16.mxu0 %v874_v4  ;;  %v906_v39 = vpack.c.bf16 %v393_v38, %v392_v37  ;;  %v617_v38 = vld [vmem:[%s1211_s6] ss:$0 sm:$0xff] }
  0x3b   :  { %849 = vmatpush3.bf16.msra.mxu1 %v846_v19  ;;  %v965_v54 = vpop.eup %964  ;;  %v388_v19 = vld [vmem:[#allocation2 + $0x190] sm:$0xff] }
  0x3c   :  { %851 = vmatprep.subr.bf16.mxu1 %v850_v22  ;;  %v167_v56 = vrot.slane %v965_v54, %v63_v40  ;;  %v394_v40 = vld [vmem:[#allocation2 + $0x1c0] sm:$0xff]  ;;  %v493_v54 = vld [vmem:[#allocation5 + $0x10] sm:$0xff] }
  0x3d   :  { %877 = vmatpush3.bf16.msra.mxu0 %v874_v4  ;;  %v910_v42 = vpack.c.bf16 %v395_v41, %v394_v40 }
  0x3e   :  { %879 = vmatprep.subr.bf16.mxu0 %v878_v7 }
  0x3f   :  { %853 = vmatpush3.bf16.msra.mxu1 %v850_v22  ;;  %v898_v22 = vpack.c.bf16 %v389_v21, %v388_v19  ;;  %v502_v19 = vld [vmem:[#allocation5 + $0x58] sm:$0xff] }
  0x40   :  { %855 = vmatprep.subr.bf16.mxu1 %v854_v25  ;;  %v946_v21 = vpack.c.bf16 %v502_v19, %v501_v18 }
  0x41   :  { %881 = vmatpush3.bf16.msra.mxu0 %v878_v7 }
  0x42   :  { %883 = vmatprep.subr.bf16.mxu0 %v882_v10 }
  0x43   :  { %857 = vmatpush3.bf16.msra.mxu1 %v854_v25  ;;  %v902_v25 = vpack.c.bf16 %v391_v24, %v390_v23  ;;  %v505_v24 = vld [vmem:[#allocation5 + $0x70] sm:$0xff] }
  0x44   :  { %859 = vmatprep.subr.bf16.mxu1 %v858_v28 }
  0x45   :  { %885 = vmatpush3.bf16.msra.mxu0 %v882_v10 }
  0x46   :  { %887 = vmatprep.subr.bf16.mxu0 %v886_v13 }
  0x47   :  { %861 = vmatpush3.bf16.msra.mxu1 %v858_v28 }
  0x48   :  { %895 = vmatprep.subr.bf16.mxu1 %v894_v20 }
  0x49   :  { %889 = vmatpush3.bf16.msra.mxu0 %v886_v13  ;;  %v498_v13 = vld [vmem:[#allocation5 + $0x38] sm:$0xff] }
  0x4a   :  { %891 = vmatprep.subr.bf16.mxu0 %v890_v16  ;;  %v938_v14 = vpack.c.bf16 %v498_v13, %v497_v12 }
  0x4d   :  { %893 = vmatpush3.bf16.msra.mxu0 %v890_v16  ;;  %v500_v16 = vld [vmem:[#allocation5 + $0x48] sm:$0xff] }
  0x4e   :  { %v942_v17 = vpack.c.bf16 %v500_v16, %v499_v15 }
  0xfc   :  { %v144_v46 = vpop.f32.mrb[0].mxu0 }
  0xfd   :  { %v145_v47 = vadd.f32 %v144_v46, %v64_v43  ;;  %v146_v48 = vpop.f32.mrb[1].mxu0 }
  0xfe   :  { %v147_v49 = vadd.f32 %v146_v48, %v68_v45 }
  0xff   :  { %966 = vtanh.f32 %v145_v47  ;;  %v399_v47 = vld [vmem:[#allocation2 + $0x1e8] sm:$0xff] }
 0x100   :  { %968 = vtanh.f32 %v147_v49  ;;  %v150_v50 = vpop.f32.mrb[2].mxu0  ;;  %v400_v49 = vld [vmem:[#allocation2 + $0x1f0] sm:$0xff] }
 0x101   :  { %v151_v51 = vadd.f32 %v150_v50, %v64_v43  ;;  %v152_v52 = vpop.f32.mrb[3].mxu0  ;;  %v396_v43 = vld [vmem:[#allocation2 + $0x1d0] sm:$0xff]  ;;  %v401_v50 = vld [vmem:[#allocation2 + $0x1f8] sm:$0xff] }
 0x102   :  { %v153_v53 = vadd.f32 %v152_v52, %v68_v45  ;;  %v398_v45 = vld [vmem:[#allocation2 + $0x1e0] sm:$0xff]  ;;  %v914_v46 = vpack.c.bf16 %v397_v44, %v396_v43 }
 0x103   :  { %970 = vtanh.f32 %v151_v51  ;;  %v918_v48 = vpack.c.bf16 %v399_v47, %v398_v45  ;;  %v922_v51 = vpack.c.bf16 %v401_v50, %v400_v49  ;;  %v491_v52 = vld [vmem:[#allocation5] sm:$0xff] }
 0x104   :  { %972 = vtanh.f32 %v153_v53  ;;  %v492_v53 = vld [vmem:[#allocation5 + $0x8] sm:$0xff] }
 0x109   :  { %v1152_v55 = vpop.eup %966 }
 0x10a   :  { %v969_v57 = vpop.eup %968 }
 0x10b   :  { %v1155_v58 = vsub.f32 %v969_v57, %v1152_v55  ;;  %v494_v57 = vld [vmem:[#allocation5 + $0x18] sm:$0xff] }
 0x10d   :  { %v1157_v59 = vpop.eup %970  ;;  %v169_v60 = vmul.f32 %v167_v56, %v1155_v58 }
 0x10e   :  { %v973_v61 = vpop.eup %972 }
 0x10f   :  { %v1161_v62 = vsub.f32 %v973_v61, %v1157_v59  ;;  %v171_v63 = vadd.f32 %v1152_v55, %v169_v60  ;;  %v930_v60 = vpack.c.bf16 %v494_v57, %v493_v54  ;;  %v495_v61 = vld [vmem:[#allocation5 + $0x20] sm:$0xff] }
 0x111   :  { %722 = vmatprep.mubr.f32.mxu1 %v171_v63  ;;  %v170_v0 = vmul.f32 %v167_v56, %v1161_v62  ;;  %v926_v56 = vpack.c.bf16 %v492_v53, %v491_v52  ;;  %v496_v63 = vld [vmem:[#allocation5 + $0x28] sm:$0xff] }
 0x113   :  { %v172_v1 = vadd.f32 %v1157_v59, %v170_v0  ;;  %927 = vmatprep.subr.bf16.mxu0 %v926_v56  ;;  %v934_v0 = vpack.c.bf16 %v496_v63, %v495_v61 }
 0x115   :  { %723 = vmatmul.mubr.f32.vlgmr.msra.gmra.mrb[0].mxu1 %v172_v1  ;;  %v614_v1 = vld [vmem:[%s1209_s4 + $0x2] ss:$0 sm:$0xff] }
 0x116   :  { %897 = vmatpush3.bf16.msra.mxu1 %v894_v20  ;;  %v503_v20 = vld [vmem:[#allocation5 + $0x60] sm:$0xff] }
 0x117   :  { %899 = vmatprep.subr.bf16.mxu1 %v898_v22 }
 0x11a   :  { %901 = vmatpush3.bf16.msra.mxu1 %v898_v22  ;;  %v504_v22 = vld [vmem:[#allocation5 + $0x68] sm:$0xff] }
 0x11b   :  { %903 = vmatprep.subr.bf16.mxu1 %v902_v25  ;;  %v950_v23 = vpack.c.bf16 %v504_v22, %v503_v20 }
 0x11e   :  { %905 = vmatpush3.bf16.msra.mxu1 %v902_v25  ;;  %v506_v25 = vld [vmem:[#allocation5 + $0x78] sm:$0xff] }
 0x11f   :  { %907 = vmatprep.subr.bf16.mxu1 %v906_v39 }
 0x122   :  { %909 = vmatpush3.bf16.msra.mxu1 %v906_v39 }
 0x123   :  { %911 = vmatprep.subr.bf16.mxu1 %v910_v42 }
 0x126   :  { %913 = vmatpush3.bf16.msra.mxu1 %v910_v42 }
 0x127   :  { %915 = vmatprep.subr.bf16.mxu1 %v914_v46 }
 0x12a   :  { %917 = vmatpush3.bf16.msra.mxu1 %v914_v46 }
 0x12b   :  { %919 = vmatprep.subr.bf16.mxu1 %v918_v48 }
 0x12e   :  { %921 = vmatpush3.bf16.msra.mxu1 %v918_v48 }
 0x12f   :  { %923 = vmatprep.subr.bf16.mxu1 %v922_v51 }
 0x132   :  { %925 = vmatpush3.bf16.msra.mxu1 %v922_v51 }
 0x1e8   :  { %v724_v27 = vpop.f32.mrb[0].mxu1 }
 0x1e9   :  { %v270_v28 = vadd.f32 %v724_v27, %v612_v26  ;;  %v264_v29 = vpop.f32.mrb[1].mxu1  ;;  %v616_v27 = vld [vmem:[%s1209_s4 + $0x3] ss:$0 sm:$0xff] }
 0x1ea   :  { %v265_v30 = vadd.f32 %v612_v26, %v264_v29  ;;  %v954_v26 = vpack.c.bf16 %v506_v25, %v505_v24 }
 0x1eb   :  { %974 = vtanh.f32 %v270_v28 }
 0x1ec   :  { %976 = vtanh.f32 %v265_v30 }
 0x1f5   :  { %v975_v31 = vpop.eup %974 }
 0x1f6   :  { %v977_v32 = vpop.eup %976  ;;  %v276_v33 = vmul.f32 %v975_v31, %v1161_v62 }
 0x1f7   :  { %v275_v34 = vmul.f32 %v977_v32, %v1155_v58 }
 0x1f8   :  { %v278_v36 = vadd.f32 %v1157_v59, %v276_v33 }
 0x1f9   :  { %v277_v35 = vadd.f32 %v1152_v55, %v275_v34 }
 0x1fb   :  { %757 = vmatprep.mubr.f32.mxu0 %v277_v35 }
 0x1fc   :  { %758 = vmatmul.mubr.f32.vlgmr.msra.gmra.mrb[4].mxu0 %v278_v36 }
 0x1fd   :  { %929 = vmatpush3.bf16.msra.mxu0 %v926_v56 }
 0x1fe   :  { %931 = vmatprep.subr.bf16.mxu0 %v930_v60 }
 0x201   :  { %933 = vmatpush3.bf16.msra.mxu0 %v930_v60 }
 0x202   :  { %935 = vmatprep.subr.bf16.mxu0 %v934_v0 }
 0x205   :  { %937 = vmatpush3.bf16.msra.mxu0 %v934_v0 }
 0x206   :  { %939 = vmatprep.subr.bf16.mxu0 %v938_v14 }
 0x209   :  { %941 = vmatpush3.bf16.msra.mxu0 %v938_v14 }
 0x20a   :  { %943 = vmatprep.subr.bf16.mxu0 %v942_v17 }
 0x20d   :  { %945 = vmatpush3.bf16.msra.mxu0 %v942_v17 }
 0x20e   :  { %947 = vmatprep.subr.bf16.mxu0 %v946_v21 }
 0x211   :  { %949 = vmatpush3.bf16.msra.mxu0 %v946_v21 }
 0x212   :  { %951 = vmatprep.subr.bf16.mxu0 %v950_v23 }
 0x215   :  { %953 = vmatpush3.bf16.msra.mxu0 %v950_v23 }
 0x216   :  { %955 = vmatprep.subr.bf16.mxu0 %v954_v26 }
 0x219   :  { %957 = vmatpush3.bf16.msra.mxu0 %v954_v26 }
 0x2cf   :  { %v759_v2 = vpop.f32.mrb[4].mxu0 }
 0x2d0   :  { %v376_v3 = vadd.f32 %v759_v2, %v614_v1  ;;  %v370_v4 = vpop.f32.mrb[5].mxu0 }
 0x2d1   :  { %v371_v5 = vadd.f32 %v614_v1, %v370_v4 }
 0x2d2   :  { %978 = vtanh.f32 %v376_v3 }
 0x2d3   :  { %980 = vtanh.f32 %v371_v5 }
 0x2dc   :  { %v979_v6 = vpop.eup %978 }
 0x2dd   :  { %v981_v7 = vpop.eup %980  ;;  %v382_v8 = vmul.f32 %v979_v6, %v1161_v62 }
 0x2de   :  { %v381_v9 = vmul.f32 %v981_v7, %v1155_v58 }
 0x2df   :  { %v384_v11 = vadd.f32 %v1157_v59, %v382_v8 }
 0x2e0   :  { %v383_v10 = vadd.f32 %v1152_v55, %v381_v9 }
 0x2e2   :  { %792 = vmatprep.mubr.f32.mxu1 %v383_v10 }
 0x2e3   :  { %793 = vmatmul.mubr.f32.vlgmr.msra.gmra.mrb[2].mxu1 %v384_v11 }
 0x3b6   :  { %v794_v28 = vpop.f32.mrb[2].mxu1 }
 0x3b7   :  { %v482_v29 = vadd.f32 %v794_v28, %v616_v27  ;;  %v476_v30 = vpop.f32.mrb[3].mxu1 }
 0x3b8   :  { %v477_v31 = vadd.f32 %v616_v27, %v476_v30 }
 0x3b9   :  { %982 = vtanh.f32 %v482_v29 }
 0x3ba   :  { %984 = vtanh.f32 %v477_v31 }
 0x3c3   :  { %v983_v32 = vpop.eup %982 }
 0x3c4   :  { %v985_v33 = vpop.eup %984  ;;  %v488_v34 = vmul.f32 %v983_v32, %v1161_v62 }
 0x3c5   :  { %v487_v35 = vmul.f32 %v985_v33, %v1155_v58 }
 0x3c6   :  { %v490_v37 = vadd.f32 %v1157_v59, %v488_v34 }
 0x3c7   :  { %v489_v36 = vadd.f32 %v1152_v55, %v487_v35 }
 0x3c9   :  { %827 = vmatprep.mubr.f32.mxu0 %v489_v36 }
 0x3ca   :  { %828 = vmatmul.mubr.f32.vlgmr.msra.gmra.mrb[6].mxu0 %v490_v37 }
 0x49d   :  { %v829_v39 = vpop.f32.mrb[6].mxu0 }
 0x49e   :  { %v586_v40 = vadd.f32 %v829_v39, %v617_v38  ;;  %v580_v41 = vpop.f32.mrb[7].mxu0 }
 0x49f   :  { %v581_v42 = vadd.f32 %v617_v38, %v580_v41 }
 0x4a0   :  { %590 = vst [vmem:[#allocation7 + $0x8] sm:$0xff] %v586_v40 }
 0x4a1   :  { %589 = vst [vmem:[#allocation7] sm:$0xff] %v581_v42 }
 0x4a2   :  { %1041 = shalt.err (!%p1038_p6)
}
 0x4a3   :  { %s1042_s6 = scalar_lea.hbm %s1212_s7, 256 }
 0x4a4   :  { %p1043_p7 = scmp.ne.s32.totalorder %s1212_s7, %s1042_s6  ;;  %p1046_p8 = scmp.lt.u32.totalorder %s1042_s6, %s1212_s7 }
 0x4a6   :  { %p1048_p9 = pnand %p1046_p8, %p1043_p7 }
 0x4a8   :  { %1051 = shalt.err (!%p1048_p9)
}
 0x4a9   :  { %602 = dma.vmem_to_hbm [thread:$0]  %s597_s21, 256, %s1212_s7, [#allocation4], %s1059_s11, %s1059_s11, %s1060_s12  }
 0x4aa   :  { %1056 = dma.done.wait [#allocation4], 256  }
 0x4ab   :  { %1057 = vsyncadd [#allocation4], 4294967040 }
 0x4ac   :  { %606 = vsyncpa [#allocation3], 1 }
 0x4ad   :  { %607 = vsyncpa [#allocation6], 1 }
 0x4ae   :  { %608 = vsyncpa [#allocation4], 1 }

</bundles_post_ra>
